<compile_context>
chip_gen: v7x
topology: tpu7x:2x2x1
jax: 0.10.0
libtpu: 0.0.40
codegen_flags: <defaults>
</compile_context>

<pallas_src>
import math

import numpy as np
import jax
import jax.numpy as jnp
from jax.experimental import pallas as pl
from jax.experimental.pallas import tpu as pltpu


def _round_up(x: int, m: int) -> int:
    return ((x + m - 1) // m) * m


def _tensorcores_per_device() -> int:
    """Best-effort TensorCores-per-device detection (2 on megacore v4/v5p and v7x)."""
    try:
        kind = jax.devices()[0].device_kind.lower()
    except Exception:
        return 1
    if any(tag in kind for tag in ("v4", "v5p", "v7", "7x")):
        return 2
    return 1


def _predictor_kernel(state_ref, wall_ref, emb_ref,
                      w1s_ref, w1we_ref, b1_ref, w2_ref, b2_ref,
                      o_ref):
    cdt = w1s_ref.dtype                                   # bf16 stream dtype
    # fc1, pass 1: state block (K = repr_dim).  f32 -> bf16 cast rides the VPU
    # under MXU/DMA slack, so the wrapper never rewrites the activations.
    h = jnp.dot(state_ref[...].astype(cdt), w1s_ref[...],
                preferred_element_type=jnp.float32)
    # fc1, pass 2: [wall(128) | zero-padded action-emb(128)] packed into a single
    # full-depth K=256 MXU pass (both pieces are exactly one vreg column wide, so
    # the concat is two aligned column copies).
    x_we = jnp.concatenate([wall_ref[...].astype(cdt), emb_ref[...]], axis=-1)
    h = h + jnp.dot(x_we, w1we_ref[...], preferred_element_type=jnp.float32)
    h = jnp.maximum(h + b1_ref[...], 0.0)                 # f32 bias + ReLU (VPU)
    # fc2
    out = jnp.dot(h.astype(cdt), w2_ref[...], preferred_element_type=jnp.float32)
    o_ref[...] = (out + b2_ref[...]).astype(o_ref.dtype)


def predictor_forward(state, action, wall, params, *,
                      batch_tile: int = 2048,
                      compute_dtype=jnp.bfloat16,
                      out_dtype=jnp.bfloat16):
    """Fused Pallas forward of Predictor.

    state:  [B, repr_dim]        f32 (or bf16)
    action: [B, 2]               f32
    wall:   [B, 1, wall_dim] or [B, wall_dim]
    params: ((Wa [2,A], ba [1,A]),
             (W1 [R+A+Wd, 2R], b1 [1,2R]),
             (W2 [2R, R], b2 [1,R]))      weights stored [in, out] (transposed
                                          relative to torch.nn.Linear).
    Returns [B, repr_dim] in `out_dtype` (bf16 by default).
    """
    (wa, ba), (w1, b1), (w2, b2) = params
    B = state.shape[0]
    wall2d = wall.reshape(B, -1)                 # wall.squeeze(1)
    S, A, W = state.shape[1], wa.shape[1], wall2d.shape[1]
    H1, OUT = w1.shape[1], w2.shape[1]
    assert w1.shape[0] == S + A + W, "fc1 input dim must match concat width"

    # --- tiny action embedding computed in the wrapper (f32 math), produced
    #     directly at a zero-padded lane-aligned width so fc1's second operand
    #     is one full K=256 MXU pass.  Padded columns are relu(0 + 0) = 0.
    Ap = _round_up(max(A, 1), 128)
    wa_p = jnp.pad(wa.astype(jnp.float32), ((0, 0), (0, Ap - A)))
    ba_p = jnp.pad(ba.astype(jnp.float32).reshape(1, A), ((0, 0), (0, Ap - A)))
    emb = jnp.maximum(action.astype(jnp.float32) @ wa_p + ba_p, 0.0)
    emb = emb.astype(compute_dtype)                                   # [B, Ap]

    # --- fc1 weight split by source; wall rows + zero-padded action rows are
    #     stacked so the kernel only issues two fc1 dots (zeros contribute 0).
    w1s_c = w1[:S].astype(compute_dtype)                              # [S, H1]
    w1a_p = jnp.pad(w1[S:S + A], ((0, Ap - A), (0, 0)))               # [Ap, H1]
    w1we_c = jnp.concatenate([w1[S + A:], w1a_p], axis=0).astype(compute_dtype)
    b1_c = b1.astype(jnp.float32).reshape(1, H1)
    w2_c = w2.astype(compute_dtype)
    b2_c = b2.astype(jnp.float32).reshape(1, OUT)

    # --- batch tiling: cdiv grid, partial last tile handled by Pallas (no padded
    #     copy).  Split into >= 2 steps only on 2-TensorCore devices.
    n_tiles = pl.cdiv(B, batch_tile)
    if n_tiles < 2 and B >= 1024 and _tensorcores_per_device() >= 2:
        n_tiles = 2
    bt = min(_round_up(pl.cdiv(B, n_tiles), 8), _round_up(B, 8))
    grid = pl.cdiv(B, bt)

    in_specs = [
        pl.BlockSpec((bt, S), lambda i: (i, 0)),        # state tile  (f32)
        pl.BlockSpec((bt, W), lambda i: (i, 0)),        # wall tile   (f32)
        pl.BlockSpec((bt, Ap), lambda i: (i, 0)),       # emb tile    (bf16)
        pl.BlockSpec(w1s_c.shape, lambda i: (0, 0)),    # weights: constant block
        pl.BlockSpec(w1we_c.shape, lambda i: (0, 0)),   # index -> DMA'd once,
        pl.BlockSpec(b1_c.shape, lambda i: (0, 0)),     # resident in VMEM
        pl.BlockSpec(w2_c.shape, lambda i: (0, 0)),
        pl.BlockSpec(b2_c.shape, lambda i: (0, 0)),
    ]
    out_spec = pl.BlockSpec((bt, OUT), lambda i: (i, 0))   # 256 lanes -> dense stores

    flops = 2 * B * (S * H1 + (W + Ap) * H1 + H1 * OUT)
    bytes_accessed = int(
        int(state.size) * state.dtype.itemsize
        + int(wall2d.size) * wall2d.dtype.itemsize
        + int(emb.size) * emb.dtype.itemsize
        + sum(int(x.size) * x.dtype.itemsize
              for x in (w1s_c, w1we_c, b1_c, w2_c, b2_c))
        + B * OUT * jnp.dtype(out_dtype).itemsize)

    out = pl.pallas_call(
        _predictor_kernel,
        out_shape=jax.ShapeDtypeStruct((B, OUT), out_dtype),
        grid_spec=pltpu.PrefetchScalarGridSpec(
            num_scalar_prefetch=0,
            grid=(grid,),
            in_specs=in_specs,
            out_specs=out_spec,
        ),
        compiler_params=pltpu.CompilerParams(
            dimension_semantics=("parallel",),
        ),
        cost_estimate=pl.CostEstimate(flops=flops, transcendentals=0,
                                      bytes_accessed=bytes_accessed),
    )(state, wall2d, emb, w1s_c, w1we_c, b1_c, w2_c, b2_c)
    return out


def init_predictor_params(key, repr_dim=256, action_dim=32, wall_dim=128):
    """Mirror torch.nn.Linear default init: U(-1/sqrt(fan_in), 1/sqrt(fan_in)).
    Weights are stored as [in, out]."""
    def linear(k, fan_in, fan_out):
        kw, kb = jax.random.split(k)
        bound = 1.0 / math.sqrt(fan_in)
        w = jax.random.uniform(kw, (fan_in, fan_out), jnp.float32, -bound, bound)
        b = jax.random.uniform(kb, (1, fan_out), jnp.float32, -bound, bound)
        return w, b

    k1, k2, k3 = jax.random.split(key, 3)
    wa, ba = linear(k1, 2, action_dim)
    w1, b1 = linear(k2, repr_dim + action_dim + wall_dim, 2 * repr_dim)
    w2, b2 = linear(k3, 2 * repr_dim, repr_dim)
    return (wa, ba), (w1, b1), (w2, b2)


def predictor_reference(state, action, wall, params,
                        compute_dtype=jnp.bfloat16, out_dtype=jnp.bfloat16):
    """Pure-JAX reference with matching bf16-stream / f32-accumulate precision."""
    (wa, ba), (w1, b1), (w2, b2) = params
    B = state.shape[0]
    emb = jnp.maximum(action @ wa + ba, 0.0)
    x = jnp.concatenate([state, emb, wall.reshape(B, -1)], axis=1).astype(compute_dtype)
    h = jnp.dot(x, w1.astype(compute_dtype), preferred_element_type=jnp.float32) + b1
    h = jnp.maximum(h, 0.0)
    out = jnp.dot(h.astype(compute_dtype), w2.astype(compute_dtype),
                  preferred_element_type=jnp.float32) + b2
    return out.astype(out_dtype)


if __name__ == "__main__":
    repr_dim, action_dim, wall_dim = 256, 32, 128

    key = jax.random.PRNGKey(0)
    kp, kdata = jax.random.split(key)
    params = init_predictor_params(kp, repr_dim, action_dim, wall_dim)

    # batch=16 (multiple of 8) and batch=12 (exercises the partial last tile)
    for batch in (16, 12):
        ks, ka, kw = jax.random.split(jax.random.fold_in(kdata, batch), 3)
        state = jax.random.normal(ks, (batch, repr_dim), jnp.float32)
        action = jax.random.normal(ka, (batch, 2), jnp.float32)
        wall = jax.random.normal(kw, (batch, 1, wall_dim), jnp.float32)

        out = jax.block_until_ready(predictor_forward(state, action, wall, params))
        ref = predictor_reference(state, action, wall, params)

        assert out.shape == (batch, repr_dim)
        np.testing.assert_allclose(np.asarray(out.astype(jnp.float32)),
                                   np.asarray(ref.astype(jnp.float32)),
                                   rtol=2e-2, atol=2e-2)

    print("KERNEL_OK")
</pallas_src>

<mosaic_0001>
module attributes {stable_mosaic.version = 11 : i64} {
  func.func @_predictor_kernel(%arg0: i32, %arg1: memref<16x256xf32, #tpu.memory_space<vmem>>, %arg2: memref<16x128xf32, #tpu.memory_space<vmem>>, %arg3: memref<16x128xbf16, #tpu.memory_space<vmem>>, %arg4: memref<256x512xbf16, #tpu.memory_space<vmem>>, %arg5: memref<256x512xbf16, #tpu.memory_space<vmem>>, %arg6: memref<1x512xf32, #tpu.memory_space<vmem>>, %arg7: memref<512x256xbf16, #tpu.memory_space<vmem>>, %arg8: memref<1x256xf32, #tpu.memory_space<vmem>>, %arg9: memref<16x256xbf16, #tpu.memory_space<vmem>>) attributes {dimension_semantics = [#tpu.dimension_semantics<parallel>], iteration_bounds = array<i64: 1>, scalar_prefetch = 0 : i64, scratch_operands = 0 : i64, tpu.core_type = #tpu.core_type<tc>, window_params = [{transform_indices = @transform_0, window_bounds = array<i64: 16, 256>}, {transform_indices = @transform_1, window_bounds = array<i64: 16, 128>}, {transform_indices = @transform_2, window_bounds = array<i64: 16, 128>}, {pipeline_mode = #tpu.pipeline_mode<synchronous>, transform_indices = @transform_3, window_bounds = array<i64: 256, 512>}, {pipeline_mode = #tpu.pipeline_mode<synchronous>, transform_indices = @transform_4, window_bounds = array<i64: 256, 512>}, {pipeline_mode = #tpu.pipeline_mode<synchronous>, transform_indices = @transform_5, window_bounds = array<i64: 1, 512>}, {pipeline_mode = #tpu.pipeline_mode<synchronous>, transform_indices = @transform_6, window_bounds = array<i64: 512, 256>}, {pipeline_mode = #tpu.pipeline_mode<synchronous>, transform_indices = @transform_7, window_bounds = array<i64: 1, 256>}, {transform_indices = @transform_8, window_bounds = array<i64: 16, 256>}]} {
    %c0 = arith.constant 0 : index
    %c0_0 = arith.constant 0 : index
    %0 = vector.load %arg1[%c0, %c0_0] : memref<16x256xf32, #tpu.memory_space<vmem>>, vector<16x256xf32>
    %1 = arith.truncf %0 : vector<16x256xf32> to vector<16x256xbf16>
    %c0_1 = arith.constant 0 : index
    %c0_2 = arith.constant 0 : index
    %2 = vector.load %arg4[%c0_1, %c0_2] : memref<256x512xbf16, #tpu.memory_space<vmem>>, vector<256x512xbf16>
    %cst = arith.constant dense<0.000000e+00> : vector<16x512xf32>
    %3 = tpu.matmul %1, %2, %cst {dimension_numbers = #tpu.dot_dimension_numbers<[1], [0], [0], [1], [0, 0, 1, 1], [], []>} : vector<16x256xbf16>, vector<256x512xbf16>, vector<16x512xf32> -> vector<16x512xf32>
    %c0_3 = arith.constant 0 : index
    %c0_4 = arith.constant 0 : index
    %4 = vector.load %arg2[%c0_3, %c0_4] : memref<16x128xf32, #tpu.memory_space<vmem>>, vector<16x128xf32>
    %5 = arith.truncf %4 : vector<16x128xf32> to vector<16x128xbf16>
    %c0_5 = arith.constant 0 : index
    %c0_6 = arith.constant 0 : index
    %6 = vector.load %arg3[%c0_5, %c0_6] : memref<16x128xbf16, #tpu.memory_space<vmem>>, vector<16x128xbf16>
    %7 = tpu.concatenate %5, %6 in 1 : vector<16x128xbf16>, vector<16x128xbf16> -> vector<16x256xbf16>
    %c0_7 = arith.constant 0 : index
    %c0_8 = arith.constant 0 : index
    %8 = vector.load %arg5[%c0_7, %c0_8] : memref<256x512xbf16, #tpu.memory_space<vmem>>, vector<256x512xbf16>
    %cst_9 = arith.constant dense<0.000000e+00> : vector<16x512xf32>
    %9 = tpu.matmul %7, %8, %cst_9 {dimension_numbers = #tpu.dot_dimension_numbers<[1], [0], [0], [1], [0, 0, 1, 1], [], []>} : vector<16x256xbf16>, vector<256x512xbf16>, vector<16x512xf32> -> vector<16x512xf32>
    %10 = arith.addf %3, %9 : vector<16x512xf32>
    %c0_10 = arith.constant 0 : index
    %c0_11 = arith.constant 0 : index
    %11 = vector.load %arg6[%c0_10, %c0_11] : memref<1x512xf32, #tpu.memory_space<vmem>>, vector<1x512xf32>
    %12 = vector.broadcast %11 : vector<1x512xf32> to vector<16x512xf32>
    %13 = arith.addf %10, %12 : vector<16x512xf32>
    %cst_12 = arith.constant 0.000000e+00 : f32
    %14 = vector.broadcast %cst_12 : f32 to vector<16x512xf32>
    %15 = arith.maximumf %13, %14 : vector<16x512xf32>
    %16 = arith.truncf %15 : vector<16x512xf32> to vector<16x512xbf16>
    %c0_13 = arith.constant 0 : index
    %c0_14 = arith.constant 0 : index
    %17 = vector.load %arg7[%c0_13, %c0_14] : memref<512x256xbf16, #tpu.memory_space<vmem>>, vector<512x256xbf16>
    %cst_15 = arith.constant dense<0.000000e+00> : vector<16x256xf32>
    %18 = tpu.matmul %16, %17, %cst_15 {dimension_numbers = #tpu.dot_dimension_numbers<[1], [0], [0], [1], [0, 0, 1, 1], [], []>} : vector<16x512xbf16>, vector<512x256xbf16>, vector<16x256xf32> -> vector<16x256xf32>
    %c0_16 = arith.constant 0 : index
    %c0_17 = arith.constant 0 : index
    %19 = vector.load %arg8[%c0_16, %c0_17] : memref<1x256xf32, #tpu.memory_space<vmem>>, vector<1x256xf32>
    %20 = vector.broadcast %19 : vector<1x256xf32> to vector<16x256xf32>
    %21 = arith.addf %18, %20 : vector<16x256xf32>
    %22 = arith.truncf %21 : vector<16x256xf32> to vector<16x256xbf16>
    %c0_18 = arith.constant 0 : index
    %c0_19 = arith.constant 0 : index
    %23 = vector.load %arg9[%c0_18, %c0_19] : memref<16x256xbf16, #tpu.memory_space<vmem>>, vector<16x256xbf16>
    tpu.vector_store %arg9[%c0_18, %c0_19], %22 {strides = array<i32>} : memref<16x256xbf16, #tpu.memory_space<vmem>>, vector<16x256xbf16>,
    return
  }
  func.func @transform_0(%arg0: i32) -> (i32, i32) {
    %c0_i32 = arith.constant 0 : i32
    %c0_i32_0 = arith.constant 0 : i32
    return %arg0, %c0_i32 : i32, i32
  }
  func.func @transform_1(%arg0: i32) -> (i32, i32) {
    %c0_i32 = arith.constant 0 : i32
    %c0_i32_0 = arith.constant 0 : i32
    return %arg0, %c0_i32 : i32, i32
  }
  func.func @transform_2(%arg0: i32) -> (i32, i32) {
    %c0_i32 = arith.constant 0 : i32
    %c0_i32_0 = arith.constant 0 : i32
    return %arg0, %c0_i32 : i32, i32
  }
  func.func @transform_3(%arg0: i32) -> (i32, i32) {
    %c0_i32 = arith.constant 0 : i32
    %c0_i32_0 = arith.constant 0 : i32
    %c0_i32_1 = arith.constant 0 : i32
    return %c0_i32, %c0_i32_0 : i32, i32
  }
  func.func @transform_4(%arg0: i32) -> (i32, i32) {
    %c0_i32 = arith.constant 0 : i32
    %c0_i32_0 = arith.constant 0 : i32
    %c0_i32_1 = arith.constant 0 : i32
    return %c0_i32, %c0_i32_0 : i32, i32
  }
  func.func @transform_5(%arg0: i32) -> (i32, i32) {
    %c0_i32 = arith.constant 0 : i32
    %c0_i32_0 = arith.constant 0 : i32
    %c0_i32_1 = arith.constant 0 : i32
    return %c0_i32, %c0_i32_0 : i32, i32
  }
  func.func @transform_6(%arg0: i32) -> (i32, i32) {
    %c0_i32 = arith.constant 0 : i32
    %c0_i32_0 = arith.constant 0 : i32
    %c0_i32_1 = arith.constant 0 : i32
    return %c0_i32, %c0_i32_0 : i32, i32
  }
  func.func @transform_7(%arg0: i32) -> (i32, i32) {
    %c0_i32 = arith.constant 0 : i32
    %c0_i32_0 = arith.constant 0 : i32
    %c0_i32_1 = arith.constant 0 : i32
    return %c0_i32, %c0_i32_0 : i32, i32
  }
  func.func @transform_8(%arg0: i32) -> (i32, i32) {
    %c0_i32 = arith.constant 0 : i32
    %c0_i32_0 = arith.constant 0 : i32
    return %arg0, %c0_i32 : i32, i32
  }
}

</mosaic_0001>

<bundles_post_ra>
// kernel: tpu_custom_call.1
= control target key start
LH: loop header
LB: loop body
LE: loop exit
PB: predicated region body
PF: predicated region fallthrough
CT: control target
= control target key end

     0   :  { %13 = vsyncpa [#allocation3], 0  ;;  %s2511_s0 = inlined_call_operand.hbm [shape: f32[16,256], index: 0, kind: input, shape index: {}]   ;;  %s2512_s1 = inlined_call_operand.hbm [shape: f32[16,128], index: 1, kind: input, shape index: {}]   ;;  %s2513_s2 = inlined_call_operand.hbm [shape: bf16[16,128], index: 2, kind: input, shape index: {}]   ;;  %s2514_s3 = inlined_call_operand.hbm [shape: bf16[256,512], index: 3, kind: input, shape index: {}]   ;;  %s2515_s4 = inlined_call_operand.hbm [shape: bf16[256,512], index: 4, kind: input, shape index: {}]   ;;  %s2516_s5 = inlined_call_operand.vmem [shape: f32[1,512], index: 5, kind: input, shape index: {}]   ;;  %s2517_s6 = inlined_call_operand.hbm [shape: bf16[512,256], index: 6, kind: input, shape index: {}]   ;;  %s2518_s7 = inlined_call_operand.vmem [shape: f32[1,256], index: 7, kind: input, shape index: {}]   ;;  %s2519_s8 = inlined_call_operand.hbm [shape: bf16[16,256], index: 8, kind: output, shape index: {}]  }
   0x1   :  { %14 = vsyncpa [#allocation6], 0 }
   0x2   :  { %15 = vsyncpa [#allocation9], 0 }
   0x3   :  { %16 = vsyncpa [#allocation12], 0 }
   0x4   :  { %17 = vsyncpa [#allocation4], 0  ;;  %s2306_s27 = smov [#allocation5]   ;;  %s2142_s9 = scalar_lea.hbm %s2512_s1, 256 }
   0x5   :  { %s35_s28 = sshll.u32 %s2306_s27, 4  ;;  %p2143_p0 = scmp.ne.s32.totalorder %s2512_s1, %s2142_s9  ;;  %s36_s28 = int_to_ptr.vmem [resolvable:$true] %s35_s28 }
   0x6   :  { %p2146_p1 = scmp.lt.u32.totalorder %s2142_s9, %s2512_s1 }
   0x8   :  { %p2148_p2 = pnand %p2146_p1, %p2143_p0 }
   0xa   :  { %2151 = shalt.err (!%p2148_p2)
}
   0xb   :  { %s2152_s14 = scalar_lea.vmem %s36_s28, 256  ;;  %p2157_p4 = scmp.lt.s32.totalorder %s36_s28, %s36_s28 }
   0xc   :  { %p2153_p3 = scmp.ne.s32.totalorder %s36_s28, %s2152_s14  ;;  %p2158_p5 = scmp.lt.s32.totalorder %s2152_s14, %s2152_s14 }
   0xe   :  { %p2159_p6 = por %p2158_p5, %p2157_p4 }
  0x10   :  { %p2160_p7 = pnand %p2159_p6, %p2153_p3 }
  0x12   :  { %2163 = shalt.err (!%p2160_p7)
}
  0x13   :  { %s2307_s15 = smov 128   ;;  %s2308_s16 = smov 8  }
  0x14   :  { %41 = dma.hbm_to_vmem [thread:$0]  %s2512_s1, 256, %s36_s28, [#allocation6], %s2307_s15, %s2307_s15, %s2308_s16  }
  0x15   :  { %s2309_s19 = smov [#allocation8]   ;;  %s2310_s21 = smov [#allocation2]  }
  0x16   :  { %s59_s20 = sshll.u32 %s2309_s19, 4  ;;  %s23_s22 = sshll.u32 %s2310_s21, 4  ;;  %s60_s20 = int_to_ptr.vmem [resolvable:$true] %s59_s20  ;;  %s24_s22 = int_to_ptr.vmem [resolvable:$true] %s23_s22 }
  0x17   :  { %s2164_s25 = scalar_lea.hbm %s2514_s3, 8192 }
  0x18   :  { %p2165_p8 = scmp.ne.s32.totalorder %s2514_s3, %s2164_s25  ;;  %p2168_p9 = scmp.lt.u32.totalorder %s2164_s25, %s2514_s3 }
  0x1a   :  { %p2170_p10 = pnand %p2168_p9, %p2165_p8 }
  0x1c   :  { %2173 = shalt.err (!%p2170_p10)
}
  0x1d   :  { %s2174_s1 = scalar_lea.vmem %s60_s20, 8192  ;;  %p2179_p12 = scmp.lt.s32.totalorder %s60_s20, %s60_s20 }
  0x1e   :  { %p2175_p11 = scmp.ne.s32.totalorder %s60_s20, %s2174_s1  ;;  %p2180_p13 = scmp.lt.s32.totalorder %s2174_s1, %s2174_s1 }
  0x20   :  { %p2181_p0 = por %p2180_p13, %p2179_p12 }
  0x22   :  { %p2182_p1 = pnand %p2181_p0, %p2175_p11 }
  0x24   :  { %2185 = shalt.err (!%p2182_p1)
}
  0x25   :  { %s2311_s28 = smov 256   ;;  %s2312_s9 = smov 16  }
  0x26   :  { %65 = dma.hbm_to_vmem [thread:$0]  %s2514_s3, 8192, %s60_s20, [#allocation9], %s2311_s28, %s2311_s28, %s2312_s9  }
  0x27   :  { %s2186_s14 = scalar_lea.hbm %s2511_s0, 512 }
  0x28   :  { %p2187_p2 = scmp.ne.s32.totalorder %s2511_s0, %s2186_s14  ;;  %p2190_p3 = scmp.lt.u32.totalorder %s2186_s14, %s2511_s0 }
  0x2a   :  { %p2192_p4 = pnand %p2190_p3, %p2187_p2 }
  0x2c   :  { %2195 = shalt.err (!%p2192_p4)
}
  0x2d   :  { %s2196_s23 = scalar_lea.vmem %s24_s22, 512  ;;  %p2201_p6 = scmp.lt.s32.totalorder %s24_s22, %s24_s22 }
  0x2e   :  { %p2197_p5 = scmp.ne.s32.totalorder %s24_s22, %s2196_s23  ;;  %p2202_p7 = scmp.lt.s32.totalorder %s2196_s23, %s2196_s23 }
  0x30   :  { %p2203_p8 = por %p2202_p7, %p2201_p6 }
  0x32   :  { %p2204_p9 = pnand %p2203_p8, %p2197_p5 }
  0x34   :  { %2207 = shalt.err (!%p2204_p9)
}
  0x35   :  { %29 = dma.hbm_to_vmem [thread:$0]  %s2511_s0, 512, %s24_s22, [#allocation3], %s2311_s28, %s2311_s28, %s2312_s9  }
  0x36   :  { %s2313_s24 = smov [#allocation7]   ;;  %s2208_s29 = scalar_lea.hbm %s2513_s2, 128 }
  0x37   :  { %s47_s25 = sshll.u32 %s2313_s24, 4  ;;  %p2209_p10 = scmp.ne.s32.totalorder %s2513_s2, %s2208_s29  ;;  %s48_s25 = int_to_ptr.vmem [resolvable:$true] %s47_s25 }
  0x38   :  { %p2212_p11 = scmp.lt.u32.totalorder %s2208_s29, %s2513_s2 }
  0x3a   :  { %p2214_p12 = pnand %p2212_p11, %p2209_p10 }
  0x3c   :  { %2217 = shalt.err (!%p2214_p12)
}
  0x3d   :  { %s2218_s12 = scalar_lea.vmem %s48_s25, 128  ;;  %p2223_p0 = scmp.lt.s32.totalorder %s48_s25, %s48_s25 }
  0x3e   :  { %p2219_p13 = scmp.ne.s32.totalorder %s48_s25, %s2218_s12  ;;  %p2224_p1 = scmp.lt.s32.totalorder %s2218_s12, %s2218_s12 }
  0x40   :  { %p2225_p2 = por %p2224_p1, %p2223_p0 }
  0x42   :  { %p2226_p3 = pnand %p2225_p2, %p2219_p13 }
  0x44   :  { %2229 = shalt.err (!%p2226_p3)
}
  0x45   :  { %s2314_s0 = smov 64   ;;  %s2315_s22 = smov 4  }
  0x46   :  { %53 = dma.hbm_to_vmem [thread:$0]  %s2513_s2, 128, %s48_s25, [#allocation6], %s2314_s0, %s2314_s0, %s2315_s22  }
  0x47   :  { %s2316_s17 = smov [#allocation10]   ;;  %s2317_s19 = smov [#allocation11]  }
  0x48   :  { %s71_s18 = sshll.u32 %s2316_s17, 4  ;;  %s85_s21 = sshll.u32 %s2317_s19, 4  ;;  %s72_s18 = int_to_ptr.vmem [resolvable:$true] %s71_s18  ;;  %s2421_s21 = int_to_ptr.vmem [resolvable:$true] %s85_s21 }
  0x49   :  { %s2230_s20 = scalar_lea.hbm %s2515_s4, 8192 }
  0x4a   :  { %p2231_p4 = scmp.ne.s32.totalorder %s2515_s4, %s2230_s20  ;;  %p2234_p5 = scmp.lt.u32.totalorder %s2230_s20, %s2515_s4 }
  0x4c   :  { %p2236_p6 = pnand %p2234_p5, %p2231_p4 }
  0x4e   :  { %2239 = shalt.err (!%p2236_p6)
}
  0x4f   :  { %s2240_s2 = scalar_lea.vmem %s72_s18, 8192  ;;  %p2245_p8 = scmp.lt.s32.totalorder %s72_s18, %s72_s18 }
  0x50   :  { %p2241_p7 = scmp.ne.s32.totalorder %s72_s18, %s2240_s2  ;;  %p2246_p9 = scmp.lt.s32.totalorder %s2240_s2, %s2240_s2 }
  0x52   :  { %p2247_p10 = por %p2246_p9, %p2245_p8 }
  0x54   :  { %p2248_p11 = pnand %p2247_p10, %p2241_p7 }
  0x56   :  { %2251 = shalt.err (!%p2248_p11)
}
  0x57   :  { %77 = dma.hbm_to_vmem [thread:$0]  %s2515_s4, 8192, %s72_s18, [#allocation9], %s2311_s28, %s2311_s28, %s2312_s9  }
  0x58   :  { %s2252_s11 = scalar_lea.hbm %s2517_s6, 8192 }
  0x59   :  { %p2253_p12 = scmp.ne.s32.totalorder %s2517_s6, %s2252_s11  ;;  %p2256_p13 = scmp.lt.u32.totalorder %s2252_s11, %s2517_s6 }
  0x5b   :  { %p2258_p0 = pnand %p2256_p13, %p2253_p12 }
  0x5d   :  { %2261 = shalt.err (!%p2258_p0)
}
  0x5e   :  { %s2262_s14 = scalar_lea.vmem %s2421_s21, 8192  ;;  %p2267_p2 = scmp.lt.s32.totalorder %s2421_s21, %s2421_s21 }
  0x5f   :  { %p2263_p1 = scmp.ne.s32.totalorder %s2421_s21, %s2262_s14  ;;  %p2268_p3 = scmp.lt.s32.totalorder %s2262_s14, %s2262_s14 }
  0x61   :  { %p2269_p4 = por %p2268_p3, %p2267_p2 }
  0x63   :  { %p2270_p5 = pnand %p2269_p4, %p2263_p1 }
  0x65   :  { %2273 = shalt.err (!%p2270_p5)
}
  0x66   :  { %91 = dma.hbm_to_vmem [thread:$0]  %s2517_s6, 8192, %s2421_s21, [#allocation12], %s2307_s15, %s2307_s15, %s2308_s16  }
  0x67   :  { %2296 = dma.done.wait [#allocation3], 512  }
  0x68   :  { %2297 = vsyncadd [#allocation3], 4294966784 }
  0x69   :  { %2298 = dma.done.wait [#allocation6], 384  }
  0x6a   :  { %2299 = vsyncadd [#allocation6], 4294966912 }
  0x6b   :  { %2300 = dma.done.wait [#allocation9], 16384  }
  0x6c   :  { %2301 = vsyncadd [#allocation9], 4294950912 }
  0x6d   :  { %2302 = dma.done.wait [#allocation12], 8192  }
  0x6e   :  { %2303 = vsyncadd [#allocation12], 4294959104  ;;  %v1853_v0 = vld [vmem:[#allocation10 + $0x4] ss:$16 sps:$4 sm:$0xff]   ;;  %v1857_v2 = vld [vmem:[#allocation10] ss:$16 sps:$4 sm:$0xff]  }
  0x6f   :  { %v1855_v1 = vld [vmem:[#allocation8 + $0x4] ss:$16 sps:$4 sm:$0xff]   ;;  %577 = vmatprep.subr.bf16.mxu1 %v1853_v0  ;;  %v1858_v3 = vld [vmem:[#allocation8] ss:$16 sps:$4 sm:$0xff]   ;;  %v1949_v47 = vld [vmem:[#allocation7] sm:$0xff]   ;;  %s2318_s18 = smov [#allocation13]  }
  0x70   :  { %983 = vmatprep.subr.bf16.mxu0 %v1855_v1  ;;  %v1859_v4 = vld [vmem:[#allocation10 + $0x24] ss:$16 sps:$4 sm:$0xff]   ;;  %578 = vmatpush1.bf16.msra.mxu1 %v1857_v2  ;;  %v1863_v6 = vld [vmem:[#allocation10 + $0x20] ss:$16 sps:$4 sm:$0xff]   ;;  %s1612_s19 = sshll.u32 %s2318_s18, 4  ;;  %s1613_s19 = int_to_ptr.vmem [resolvable:$true] %s1612_s19 }
  0x71   :  { %984 = vmatpush1.bf16.msra.mxu0 %v1858_v3  ;;  %v1861_v5 = vld [vmem:[#allocation8 + $0x24] ss:$16 sps:$4 sm:$0xff]   ;;  %579 = vmatprep.subr.bf16.mxu1 %v1859_v4  ;;  %v1864_v7 = vld [vmem:[#allocation8 + $0x20] ss:$16 sps:$4 sm:$0xff]   ;;  %v182_v4 = vld [vmem:[#allocation5] sm:$0xff]  ;;  %p2279_p7 = scmp.lt.s32.totalorder %s1613_s19, %s1613_s19 }
  0x72   :  { %985 = vmatprep.subr.bf16.mxu0 %v1861_v5  ;;  %v1865_v8 = vld [vmem:[#allocation10 + $0x44] ss:$16 sps:$4 sm:$0xff]   ;;  %v1869_v10 = vld [vmem:[#allocation10 + $0x40] ss:$16 sps:$4 sm:$0xff]   ;;  %609 = vmatprep.mubr.bf16.mxu1 %v1949_v47 }
  0x73   :  { %v1867_v9 = vld [vmem:[#allocation8 + $0x44] ss:$16 sps:$4 sm:$0xff]   ;;  %v1870_v11 = vld [vmem:[#allocation8 + $0x40] ss:$16 sps:$4 sm:$0xff]  }
  0x74   :  { %580 = vmatpush1.bf16.msra.mxu1 %v1863_v6  ;;  %v1871_v12 = vld [vmem:[#allocation10 + $0x64] ss:$16 sps:$4 sm:$0xff]   ;;  %v1875_v14 = vld [vmem:[#allocation10 + $0x60] ss:$16 sps:$4 sm:$0xff]   ;;  %v112_v6 = vld [vmem:[#allocation2] sm:$0xff] }
  0x75   :  { %986 = vmatpush1.bf16.msra.mxu0 %v1864_v7  ;;  %581 = vmatprep.subr.bf16.mxu1 %v1865_v8  ;;  %v1873_v13 = vld [vmem:[#allocation8 + $0x64] ss:$16 sps:$4 sm:$0xff]   ;;  %v1876_v15 = vld [vmem:[#allocation8 + $0x60] ss:$16 sps:$4 sm:$0xff]   ;;  %v114_v7 = vld [vmem:[#allocation2 + $0x10] sm:$0xff] }
  0x76   :  { %987 = vmatprep.subr.bf16.mxu0 %v1867_v9  ;;  %v1877_v16 = vld [vmem:[#allocation10 + $0x84] ss:$16 sps:$4 sm:$0xff]   ;;  %v1881_v18 = vld [vmem:[#allocation10 + $0x80] ss:$16 sps:$4 sm:$0xff]   ;;  %v1952_v8 = vld [vmem:[#allocation10 + $0xc] ss:$16 sps:$4 sm:$0xff]  }
  0x77   :  { %v1879_v17 = vld [vmem:[#allocation8 + $0x84] ss:$16 sps:$4 sm:$0xff]   ;;  %v1882_v19 = vld [vmem:[#allocation8 + $0x80] ss:$16 sps:$4 sm:$0xff]  }
  0x78   :  { %582 = vmatpush1.bf16.msra.mxu1 %v1869_v10  ;;  %v1883_v20 = vld [vmem:[#allocation10 + $0xa4] ss:$16 sps:$4 sm:$0xff]   ;;  %v1887_v22 = vld [vmem:[#allocation10 + $0xa0] ss:$16 sps:$4 sm:$0xff]   ;;  %v2463_v10 = vpack.c.bf16 %v114_v7, %v112_v6  ;;  %v2006_v6 = vld [vmem:[#allocation8 + $0x4c] ss:$16 sps:$4 sm:$0xff]  }
  0x79   :  { %988 = vmatpush1.bf16.msra.mxu0 %v1870_v11  ;;  %583 = vmatprep.subr.bf16.mxu1 %v1871_v12  ;;  %v1885_v21 = vld [vmem:[#allocation8 + $0xa4] ss:$16 sps:$4 sm:$0xff]   ;;  %v1888_v23 = vld [vmem:[#allocation8 + $0xa0] ss:$16 sps:$4 sm:$0xff]   ;;  %v1950_v11 = vld [vmem:[#allocation10 + $0x8] ss:$16 sps:$4 sm:$0xff]  }
  0x7a   :  { %989 = vmatprep.subr.bf16.mxu0 %v1873_v13  ;;  %v1889_v24 = vld [vmem:[#allocation10 + $0xc4] ss:$16 sps:$4 sm:$0xff]   ;;  %v1893_v26 = vld [vmem:[#allocation10 + $0xc0] ss:$16 sps:$4 sm:$0xff]   ;;  %v1955_v12 = vld [vmem:[#allocation10 + $0x2c] ss:$16 sps:$4 sm:$0xff]  }
  0x7b   :  { %v1891_v25 = vld [vmem:[#allocation8 + $0xc4] ss:$16 sps:$4 sm:$0xff]   ;;  %v1894_v27 = vld [vmem:[#allocation8 + $0xc0] ss:$16 sps:$4 sm:$0xff]   ;;  %v1953_v13 = vld [vmem:[#allocation10 + $0x28] ss:$16 sps:$4 sm:$0xff]  }
  0x7c   :  { %584 = vmatpush1.bf16.msra.mxu1 %v1875_v14  ;;  %v1895_v28 = vld [vmem:[#allocation10 + $0xe4] ss:$16 sps:$4 sm:$0xff]   ;;  %v1899_v30 = vld [vmem:[#allocation10 + $0xe0] ss:$16 sps:$4 sm:$0xff]   ;;  %v1958_v14 = vld [vmem:[#allocation10 + $0x4c] ss:$16 sps:$4 sm:$0xff]  }
  0x7d   :  { %990 = vmatpush1.bf16.msra.mxu0 %v1876_v15  ;;  %585 = vmatprep.subr.bf16.mxu1 %v1877_v16  ;;  %v1897_v29 = vld [vmem:[#allocation8 + $0xe4] ss:$16 sps:$4 sm:$0xff]   ;;  %v1900_v31 = vld [vmem:[#allocation8 + $0xe0] ss:$16 sps:$4 sm:$0xff]   ;;  %v1956_v15 = vld [vmem:[#allocation10 + $0x48] ss:$16 sps:$4 sm:$0xff]  }
  0x7e   :  { %991 = vmatprep.subr.bf16.mxu0 %v1879_v17  ;;  %v1901_v32 = vld [vmem:[#allocation10 + $0x104] ss:$16 sps:$4 sm:$0xff]   ;;  %v1905_v34 = vld [vmem:[#allocation10 + $0x100] ss:$16 sps:$4 sm:$0xff]   ;;  %v1961_v16 = vld [vmem:[#allocation10 + $0x6c] ss:$16 sps:$4 sm:$0xff]  }
  0x7f   :  { %v1903_v33 = vld [vmem:[#allocation8 + $0x104] ss:$16 sps:$4 sm:$0xff]   ;;  %v1906_v35 = vld [vmem:[#allocation8 + $0x100] ss:$16 sps:$4 sm:$0xff]   ;;  %v1959_v17 = vld [vmem:[#allocation10 + $0x68] ss:$16 sps:$4 sm:$0xff]  }
  0x80   :  { %586 = vmatpush1.bf16.msra.mxu1 %v1881_v18  ;;  %v1907_v36 = vld [vmem:[#allocation10 + $0x124] ss:$16 sps:$4 sm:$0xff]   ;;  %v1911_v38 = vld [vmem:[#allocation10 + $0x120] ss:$16 sps:$4 sm:$0xff]   ;;  %v1964_v18 = vld [vmem:[#allocation10 + $0x8c] ss:$16 sps:$4 sm:$0xff]  }
  0x81   :  { %992 = vmatpush1.bf16.msra.mxu0 %v1882_v19  ;;  %587 = vmatprep.subr.bf16.mxu1 %v1883_v20  ;;  %v1909_v37 = vld [vmem:[#allocation8 + $0x124] ss:$16 sps:$4 sm:$0xff]   ;;  %v1912_v39 = vld [vmem:[#allocation8 + $0x120] ss:$16 sps:$4 sm:$0xff]   ;;  %v1962_v19 = vld [vmem:[#allocation10 + $0x88] ss:$16 sps:$4 sm:$0xff]  }
  0x82   :  { %993 = vmatprep.subr.bf16.mxu0 %v1885_v21  ;;  %v1913_v40 = vld [vmem:[#allocation10 + $0x144] ss:$16 sps:$4 sm:$0xff]   ;;  %v1917_v42 = vld [vmem:[#allocation10 + $0x140] ss:$16 sps:$4 sm:$0xff]   ;;  %v1967_v20 = vld [vmem:[#allocation10 + $0xac] ss:$16 sps:$4 sm:$0xff]  }
  0x83   :  { %v1915_v41 = vld [vmem:[#allocation8 + $0x144] ss:$16 sps:$4 sm:$0xff]   ;;  %v1918_v43 = vld [vmem:[#allocation8 + $0x140] ss:$16 sps:$4 sm:$0xff]   ;;  %v1965_v21 = vld [vmem:[#allocation10 + $0xa8] ss:$16 sps:$4 sm:$0xff]  }
  0x84   :  { %588 = vmatpush1.bf16.msra.mxu1 %v1887_v22  ;;  %v1919_v44 = vld [vmem:[#allocation10 + $0x164] ss:$16 sps:$4 sm:$0xff]   ;;  %v1923_v46 = vld [vmem:[#allocation10 + $0x160] ss:$16 sps:$4 sm:$0xff]   ;;  %v1970_v22 = vld [vmem:[#allocation10 + $0xcc] ss:$16 sps:$4 sm:$0xff]  }
  0x85   :  { %994 = vmatpush1.bf16.msra.mxu0 %v1888_v23  ;;  %589 = vmatprep.subr.bf16.mxu1 %v1889_v24  ;;  %v1921_v45 = vld [vmem:[#allocation8 + $0x164] ss:$16 sps:$4 sm:$0xff]   ;;  %v1924_v49 = vld [vmem:[#allocation8 + $0x160] ss:$16 sps:$4 sm:$0xff]   ;;  %v1968_v23 = vld [vmem:[#allocation10 + $0xc8] ss:$16 sps:$4 sm:$0xff]  }
  0x86   :  { %995 = vmatprep.subr.bf16.mxu0 %v1891_v25  ;;  %v113_v48 = vld [vmem:[#allocation2 + $0x8] sm:$0xff]  ;;  %v115_v51 = vld [vmem:[#allocation2 + $0x18] sm:$0xff]  ;;  %v1973_v24 = vld [vmem:[#allocation10 + $0xec] ss:$16 sps:$4 sm:$0xff]  }
  0x87   :  { %v1925_v50 = vld [vmem:[#allocation10 + $0x184] ss:$16 sps:$4 sm:$0xff]   ;;  %v2458_v53 = vpack.c.bf16 %v115_v51, %v113_v48  ;;  %v1929_v54 = vld [vmem:[#allocation10 + $0x180] ss:$16 sps:$4 sm:$0xff]   ;;  %v1986_v48 = vld [vmem:[#allocation10 + $0x188] ss:$16 sps:$4 sm:$0xff]  }
  0x88   :  { %590 = vmatpush1.bf16.msra.mxu1 %v1893_v26  ;;  %v1927_v52 = vld [vmem:[#allocation8 + $0x184] ss:$16 sps:$4 sm:$0xff]   ;;  %v1930_v55 = vld [vmem:[#allocation8 + $0x180] ss:$16 sps:$4 sm:$0xff]  }
  0x89   :  { %996 = vmatpush1.bf16.msra.mxu0 %v1894_v27  ;;  %591 = vmatprep.subr.bf16.mxu1 %v1895_v28  ;;  %v1931_v56 = vld [vmem:[#allocation10 + $0x1a4] ss:$16 sps:$4 sm:$0xff]   ;;  %v1935_v58 = vld [vmem:[#allocation10 + $0x1a0] ss:$16 sps:$4 sm:$0xff]   ;;  %v1971_v28 = vld [vmem:[#allocation10 + $0xe8] ss:$16 sps:$4 sm:$0xff]  }
  0x8a   :  { %997 = vmatprep.subr.bf16.mxu0 %v1897_v29  ;;  %1015 = vmatprep.mubr.bf16.mxu0 %v2458_v53  ;;  %v1933_v57 = vld [vmem:[#allocation8 + $0x1a4] ss:$16 sps:$4 sm:$0xff]   ;;  %v1936_v59 = vld [vmem:[#allocation8 + $0x1a0] ss:$16 sps:$4 sm:$0xff]  }
  0x8b   :  { %v1937_v60 = vld [vmem:[#allocation10 + $0x1c4] ss:$16 sps:$4 sm:$0xff]   ;;  %v1941_v62 = vld [vmem:[#allocation10 + $0x1c0] ss:$16 sps:$4 sm:$0xff]  }
  0x8c   :  { %592 = vmatpush1.bf16.msra.mxu1 %v1899_v30  ;;  %v1939_v61 = vld [vmem:[#allocation8 + $0x1c4] ss:$16 sps:$4 sm:$0xff]   ;;  %v1942_v63 = vld [vmem:[#allocation8 + $0x1c0] ss:$16 sps:$4 sm:$0xff]   ;;  %v1976_v30 = vld [vmem:[#allocation10 + $0x10c] ss:$16 sps:$4 sm:$0xff]  }
  0x8d   :  { %998 = vmatpush1.bf16.msra.mxu0 %v1900_v31  ;;  %593 = vmatprep.subr.bf16.mxu1 %v1901_v32  ;;  %v1943_v0 = vld [vmem:[#allocation10 + $0x1e4] ss:$16 sps:$4 sm:$0xff]   ;;  %v1947_v2 = vld [vmem:[#allocation10 + $0x1e0] ss:$16 sps:$4 sm:$0xff]   ;;  %v1974_v32 = vld [vmem:[#allocation10 + $0x108] ss:$16 sps:$4 sm:$0xff]  }
  0x8e   :  { %999 = vmatprep.subr.bf16.mxu0 %v1903_v33  ;;  %v1945_v1 = vld [vmem:[#allocation8 + $0x1e4] ss:$16 sps:$4 sm:$0xff]   ;;  %v1948_v3 = vld [vmem:[#allocation8 + $0x1e0] ss:$16 sps:$4 sm:$0xff]  }
  0x8f   :  { %v183_v5 = vld [vmem:[#allocation5 + $0x8] sm:$0xff]  ;;  %v2046_v25 = vld [vmem:[#allocation11] ss:$8 sps:$4 sm:$0xff]   ;;  %v2048_v26 = vld [vmem:[#allocation11 + $0x4] ss:$8 sps:$4 sm:$0xff]  }
  0x90   :  { %594 = vmatpush1.bf16.msra.mxu1 %v1905_v34  ;;  %v2461_v9 = vpack.c.bf16 %v183_v5, %v182_v4  ;;  %v2051_v27 = vld [vmem:[#allocation11 + $0x14] ss:$8 sps:$4 sm:$0xff]   ;;  %v2049_v29 = vld [vmem:[#allocation11 + $0x10] ss:$8 sps:$4 sm:$0xff]   ;;  %v2054_v31 = vld [vmem:[#allocation11 + $0x24] ss:$8 sps:$4 sm:$0xff]  }
  0x91   :  { %1000 = vmatpush1.bf16.msra.mxu0 %v1906_v35  ;;  %595 = vmatprep.subr.bf16.mxu1 %v1907_v36  ;;  %v2052_v33 = vld [vmem:[#allocation11 + $0x20] ss:$8 sps:$4 sm:$0xff]   ;;  %v1979_v34 = vld [vmem:[#allocation10 + $0x12c] ss:$16 sps:$4 sm:$0xff]   ;;  %v2079_v7 = vld [vmem:[#allocation11 + $0xb0] ss:$8 sps:$4 sm:$0xff]  }
  0x92   :  { %1001 = vmatprep.subr.bf16.mxu0 %v1909_v37  ;;  %v2057_v35 = vld [vmem:[#allocation11 + $0x34] ss:$8 sps:$4 sm:$0xff]   ;;  %v1977_v36 = vld [vmem:[#allocation10 + $0x128] ss:$16 sps:$4 sm:$0xff]  }
  0x93   :  { %v2055_v37 = vld [vmem:[#allocation11 + $0x30] ss:$8 sps:$4 sm:$0xff]   ;;  %v2069_v51 = vld [vmem:[#allocation11 + $0x74] ss:$8 sps:$4 sm:$0xff]  }
  0x94   :  { %596 = vmatpush1.bf16.msra.mxu1 %v1911_v38  ;;  %v1982_v38 = vld [vmem:[#allocation10 + $0x14c] ss:$16 sps:$4 sm:$0xff]   ;;  %v2001_v5 = vld [vmem:[#allocation8 + $0x28] ss:$16 sps:$4 sm:$0xff]  }
  0x95   :  { %1002 = vmatpush1.bf16.msra.mxu0 %v1912_v39  ;;  %597 = vmatprep.subr.bf16.mxu1 %v1913_v40  ;;  %v2060_v39 = vld [vmem:[#allocation11 + $0x44] ss:$8 sps:$4 sm:$0xff]   ;;  %v1980_v40 = vld [vmem:[#allocation10 + $0x148] ss:$16 sps:$4 sm:$0xff]   ;;  %v2081_v4 = vld [vmem:[#allocation11 + $0xb4] ss:$8 sps:$4 sm:$0xff]  }
  0x96   :  { %1003 = vmatprep.subr.bf16.mxu0 %v1915_v41  ;;  %v2058_v41 = vld [vmem:[#allocation11 + $0x40] ss:$8 sps:$4 sm:$0xff]  }
  0x98   :  { %598 = vmatpush1.bf16.msra.mxu1 %v1917_v42  ;;  %v1985_v42 = vld [vmem:[#allocation10 + $0x16c] ss:$16 sps:$4 sm:$0xff]  }
  0x99   :  { %1004 = vmatpush1.bf16.msra.mxu0 %v1918_v43  ;;  %599 = vmatprep.subr.bf16.mxu1 %v1919_v44  ;;  %v2063_v43 = vld [vmem:[#allocation11 + $0x54] ss:$8 sps:$4 sm:$0xff]   ;;  %v1983_v44 = vld [vmem:[#allocation10 + $0x168] ss:$16 sps:$4 sm:$0xff]  }
  0x9a   :  { %1005 = vmatprep.subr.bf16.mxu0 %v1921_v45  ;;  %v2061_v45 = vld [vmem:[#allocation11 + $0x50] ss:$8 sps:$4 sm:$0xff]  }
  0x9c   :  { %600 = vmatpush1.bf16.msra.mxu1 %v1923_v46  ;;  %v1988_v46 = vld [vmem:[#allocation10 + $0x18c] ss:$16 sps:$4 sm:$0xff]  }
  0x9d   :  { %1006 = vmatpush1.bf16.msra.mxu0 %v1924_v49  ;;  %601 = vmatprep.subr.bf16.mxu1 %v1925_v50  ;;  %v2064_v49 = vld [vmem:[#allocation11 + $0x60] ss:$8 sps:$4 sm:$0xff]   ;;  %v1991_v50 = vld [vmem:[#allocation10 + $0x1ac] ss:$16 sps:$4 sm:$0xff]  }
  0x9e   :  { %1007 = vmatprep.subr.bf16.mxu0 %v1927_v52  ;;  %v1989_v52 = vld [vmem:[#allocation10 + $0x1a8] ss:$16 sps:$4 sm:$0xff]  }
  0xa0   :  { %602 = vmatpush1.bf16.msra.mxu1 %v1929_v54  ;;  %v2067_v54 = vld [vmem:[#allocation11 + $0x70] ss:$8 sps:$4 sm:$0xff]  }
  0xa1   :  { %1008 = vmatpush1.bf16.msra.mxu0 %v1930_v55  ;;  %603 = vmatprep.subr.bf16.mxu1 %v1931_v56  ;;  %v1994_v55 = vld [vmem:[#allocation10 + $0x1cc] ss:$16 sps:$4 sm:$0xff]  }
  0xa2   :  { %1009 = vmatprep.subr.bf16.mxu0 %v1933_v57  ;;  %v2072_v56 = vld [vmem:[#allocation11 + $0x84] ss:$8 sps:$4 sm:$0xff]   ;;  %v1992_v57 = vld [vmem:[#allocation10 + $0x1c8] ss:$16 sps:$4 sm:$0xff]  }
  0xa4   :  { %604 = vmatpush1.bf16.msra.mxu1 %v1935_v58  ;;  %v2070_v58 = vld [vmem:[#allocation11 + $0x80] ss:$8 sps:$4 sm:$0xff]  }
  0xa5   :  { %1010 = vmatpush1.bf16.msra.mxu0 %v1936_v59  ;;  %605 = vmatprep.subr.bf16.mxu1 %v1937_v60  ;;  %v1997_v59 = vld [vmem:[#allocation10 + $0x1ec] ss:$16 sps:$4 sm:$0xff]  }
  0xa6   :  { %1011 = vmatprep.subr.bf16.mxu0 %v1939_v61  ;;  %v2075_v60 = vld [vmem:[#allocation11 + $0x94] ss:$8 sps:$4 sm:$0xff]   ;;  %v1995_v61 = vld [vmem:[#allocation10 + $0x1e8] ss:$16 sps:$4 sm:$0xff]  }
  0xa8   :  { %606 = vmatpush1.bf16.msra.mxu1 %v1941_v62  ;;  %v2073_v62 = vld [vmem:[#allocation11 + $0x90] ss:$8 sps:$4 sm:$0xff]  }
  0xa9   :  { %1012 = vmatpush1.bf16.msra.mxu0 %v1942_v63  ;;  %607 = vmatprep.subr.bf16.mxu1 %v1943_v0  ;;  %v2000_v63 = vld [vmem:[#allocation8 + $0xc] ss:$16 sps:$4 sm:$0xff]  }
  0xaa   :  { %1013 = vmatprep.subr.bf16.mxu0 %v1945_v1  ;;  %v2078_v0 = vld [vmem:[#allocation11 + $0xa4] ss:$8 sps:$4 sm:$0xff]   ;;  %v1998_v1 = vld [vmem:[#allocation8 + $0x8] ss:$16 sps:$4 sm:$0xff]  }
  0xac   :  { %608 = vmatpush1.bf16.msra.mxu1 %v1947_v2  ;;  %v2003_v2 = vld [vmem:[#allocation8 + $0x2c] ss:$16 sps:$4 sm:$0xff]  }
  0xad   :  { %1014 = vmatpush1.bf16.msra.mxu0 %v1948_v3  ;;  %620 = vmatprep.subr.bf16.mxu1 %v1952_v8  ;;  %v2076_v3 = vld [vmem:[#allocation11 + $0xa0] ss:$8 sps:$4 sm:$0xff]   ;;  %v2084_v8 = vld [vmem:[#allocation11 + $0xc4] ss:$8 sps:$4 sm:$0xff]  }
  0xae   :  { %1507 = vmatprep.subr.bf16.mxu0 %v2048_v26  ;;  %v2093_v26 = vld [vmem:[#allocation11 + $0xf4] ss:$8 sps:$4 sm:$0xff]  }
  0xaf   :  { %610 = vmatmul.mubr.bf16.vlgmr.msra.gmra.mrb[0].mxu1 %v2461_v9 }
  0xb0   :  { %1016 = vmatmul.mubr.bf16.vlgmr.msra.gmra.mrb[0].mxu0 %v2463_v10  ;;  %621 = vmatpush1.bf16.msra.mxu1 %v1950_v11  ;;  %v2004_v11 = vld [vmem:[#allocation8 + $0x48] ss:$16 sps:$4 sm:$0xff]  }
  0xb1   :  { %652 = vmatprep.mubr.bf16.mxu1 %v1949_v47  ;;  %622 = vmatprep.subr.bf16.mxu1 %v1955_v12  ;;  %v2066_v47 = vld [vmem:[#allocation11 + $0x64] ss:$8 sps:$4 sm:$0xff]  }
  0xb2   :  { %1508 = vmatpush1.bf16.msra.mxu0 %v2046_v25  ;;  %v2009_v12 = vld [vmem:[#allocation8 + $0x6c] ss:$16 sps:$4 sm:$0xff]  }
  0xb3   :  { %1509 = vmatprep.subr.bf16.mxu0 %v2051_v27  ;;  %v2024_v25 = vld [vmem:[#allocation8 + $0x10c] ss:$16 sps:$4 sm:$0xff]   ;;  %v2091_v27 = vld [vmem:[#allocation11 + $0xf0] ss:$8 sps:$4 sm:$0xff]  }
  0xb4   :  { %623 = vmatpush1.bf16.msra.mxu1 %v1953_v13  ;;  %v2082_v13 = vld [vmem:[#allocation11 + $0xc0] ss:$8 sps:$4 sm:$0xff]  }
  0xb5   :  { %624 = vmatprep.subr.bf16.mxu1 %v1958_v14  ;;  %v2007_v14 = vld [vmem:[#allocation8 + $0x68] ss:$16 sps:$4 sm:$0xff]  }
  0xb6   :  { %1510 = vmatpush1.bf16.msra.mxu0 %v2049_v29  ;;  %v2027_v29 = vld [vmem:[#allocation8 + $0x12c] ss:$16 sps:$4 sm:$0xff]  }
  0xb7   :  { %1511 = vmatprep.subr.bf16.mxu0 %v2054_v31  ;;  %v2025_v31 = vld [vmem:[#allocation8 + $0x128] ss:$16 sps:$4 sm:$0xff]  }
  0xb8   :  { %625 = vmatpush1.bf16.msra.mxu1 %v1956_v15  ;;  %v2015_v15 = vld [vmem:[#allocation8 + $0xac] ss:$16 sps:$4 sm:$0xff]  }
  0xb9   :  { %626 = vmatprep.subr.bf16.mxu1 %v1961_v16  ;;  %v2013_v16 = vld [vmem:[#allocation8 + $0xa8] ss:$16 sps:$4 sm:$0xff]  }
  0xba   :  { %1512 = vmatpush1.bf16.msra.mxu0 %v2052_v33  ;;  %v2028_v33 = vld [vmem:[#allocation8 + $0x148] ss:$16 sps:$4 sm:$0xff]  }
  0xbb   :  { %1513 = vmatprep.subr.bf16.mxu0 %v2057_v35  ;;  %v2031_v35 = vld [vmem:[#allocation8 + $0x168] ss:$16 sps:$4 sm:$0xff]  }
  0xbc   :  { %627 = vmatpush1.bf16.msra.mxu1 %v1959_v17  ;;  %v2018_v17 = vld [vmem:[#allocation8 + $0xcc] ss:$16 sps:$4 sm:$0xff]  }
  0xbd   :  { %628 = vmatprep.subr.bf16.mxu1 %v1964_v18  ;;  %v2087_v18 = vld [vmem:[#allocation11 + $0xd4] ss:$8 sps:$4 sm:$0xff]  }
  0xbe   :  { %1514 = vmatpush1.bf16.msra.mxu0 %v2055_v37  ;;  %v2034_v37 = vld [vmem:[#allocation8 + $0x188] ss:$16 sps:$4 sm:$0xff]  }
  0xbf   :  { %1515 = vmatprep.subr.bf16.mxu0 %v2060_v39  ;;  %v2037_v39 = vld [vmem:[#allocation8 + $0x1a8] ss:$16 sps:$4 sm:$0xff]  }
  0xc0   :  { %629 = vmatpush1.bf16.msra.mxu1 %v1962_v19  ;;  %v2085_v19 = vld [vmem:[#allocation11 + $0xd0] ss:$8 sps:$4 sm:$0xff]  }
  0xc1   :  { %630 = vmatprep.subr.bf16.mxu1 %v1967_v20  ;;  %v2016_v20 = vld [vmem:[#allocation8 + $0xc8] ss:$16 sps:$4 sm:$0xff]  }
  0xc2   :  { %1516 = vmatpush1.bf16.msra.mxu0 %v2058_v41  ;;  %v2040_v41 = vld [vmem:[#allocation8 + $0x1c8] ss:$16 sps:$4 sm:$0xff]  }
  0xc3   :  { %1517 = vmatprep.subr.bf16.mxu0 %v2063_v43  ;;  %v2043_v43 = vld [vmem:[#allocation8 + $0x1e8] ss:$16 sps:$4 sm:$0xff]  }
  0xc4   :  { %631 = vmatpush1.bf16.msra.mxu1 %v1965_v21  ;;  %v2021_v21 = vld [vmem:[#allocation8 + $0xec] ss:$16 sps:$4 sm:$0xff]  }
  0xc5   :  { %632 = vmatprep.subr.bf16.mxu1 %v1970_v22  ;;  %v2090_v22 = vld [vmem:[#allocation11 + $0xe4] ss:$8 sps:$4 sm:$0xff]  }
  0xc6   :  { %1518 = vmatpush1.bf16.msra.mxu0 %v2061_v45 }
  0xc7   :  { %1519 = vmatprep.subr.bf16.mxu0 %v2066_v47  ;;  %v2476_v47 = vld [vmem:[%s2516_s5] sm:$0xf] }
  0xc8   :  { %633 = vmatpush1.bf16.msra.mxu1 %v1968_v23  ;;  %v2088_v23 = vld [vmem:[#allocation11 + $0xe0] ss:$8 sps:$4 sm:$0xff]  }
  0xc9   :  { %634 = vmatprep.subr.bf16.mxu1 %v1973_v24  ;;  %v2019_v24 = vld [vmem:[#allocation8 + $0xe8] ss:$16 sps:$4 sm:$0xff]  }
  0xca   :  { %1520 = vmatpush1.bf16.msra.mxu0 %v2064_v49 }
  0xcb   :  { %1521 = vmatprep.subr.bf16.mxu0 %v2069_v51 }
  0xcc   :  { %635 = vmatpush1.bf16.msra.mxu1 %v1971_v28  ;;  %v2022_v28 = vld [vmem:[#allocation8 + $0x108] ss:$16 sps:$4 sm:$0xff]  }
  0xcd   :  { %636 = vmatprep.subr.bf16.mxu1 %v1976_v30  ;;  %v2096_v30 = vld [vmem:[#allocation11 + $0x104] ss:$8 sps:$4 sm:$0xff]  }
  0xce   :  { %1522 = vmatpush1.bf16.msra.mxu0 %v2067_v54 }
  0xcf   :  { %1523 = vmatprep.subr.bf16.mxu0 %v2072_v56 }
  0xd0   :  { %637 = vmatpush1.bf16.msra.mxu1 %v1974_v32  ;;  %v2030_v32 = vld [vmem:[#allocation8 + $0x14c] ss:$16 sps:$4 sm:$0xff]  }
  0xd1   :  { %638 = vmatprep.subr.bf16.mxu1 %v1979_v34  ;;  %v2033_v34 = vld [vmem:[#allocation8 + $0x16c] ss:$16 sps:$4 sm:$0xff]  }
  0xd2   :  { %1524 = vmatpush1.bf16.msra.mxu0 %v2070_v58 }
  0xd3   :  { %1525 = vmatprep.subr.bf16.mxu0 %v2075_v60 }
  0xd4   :  { %639 = vmatpush1.bf16.msra.mxu1 %v1977_v36  ;;  %v2036_v36 = vld [vmem:[#allocation8 + $0x18c] ss:$16 sps:$4 sm:$0xff]  }
  0xd5   :  { %640 = vmatprep.subr.bf16.mxu1 %v1982_v38  ;;  %v2039_v38 = vld [vmem:[#allocation8 + $0x1ac] ss:$16 sps:$4 sm:$0xff]  }
  0xd6   :  { %1526 = vmatpush1.bf16.msra.mxu0 %v2073_v62 }
  0xd7   :  { %1527 = vmatprep.subr.bf16.mxu0 %v2078_v0 }
  0xd8   :  { %641 = vmatpush1.bf16.msra.mxu1 %v1980_v40  ;;  %v2042_v40 = vld [vmem:[#allocation8 + $0x1cc] ss:$16 sps:$4 sm:$0xff]  }
  0xd9   :  { %642 = vmatprep.subr.bf16.mxu1 %v1985_v42  ;;  %v2045_v42 = vld [vmem:[#allocation8 + $0x1ec] ss:$16 sps:$4 sm:$0xff]  }
  0xda   :  { %1528 = vmatpush1.bf16.msra.mxu0 %v2076_v3 }
  0xdb   :  { %1529 = vmatprep.subr.bf16.mxu0 %v2081_v4 }
  0xdc   :  { %643 = vmatpush1.bf16.msra.mxu1 %v1983_v44  ;;  %v1071_v44 = vlaneseq }
  0xdd   :  { %644 = vmatprep.subr.bf16.mxu1 %v1988_v46 }
  0xde   :  { %1530 = vmatpush1.bf16.msra.mxu0 %v2079_v7  ;;  %v2470_v45 = vshrl.u32 %v1071_v44, 7 }
  0xdf   :  { %1531 = vmatprep.subr.bf16.mxu0 %v2084_v8 }
  0xe0   :  { %645 = vmatpush1.bf16.msra.mxu1 %v1986_v48  ;;  %v1073_v46 = vsub.s32 0, %v2470_v45  ;;  %v1077_v48 = vsub.s32 1, %v2470_v45 }
  0xe1   :  { %646 = vmatprep.subr.bf16.mxu1 %v1991_v50 }
  0xe2   :  { %1532 = vmatpush1.bf16.msra.mxu0 %v2082_v13  ;;  %v1074_v49 = vrot.slane %v2476_v47, %v1073_v46  ;;  %v2097_v13 = vld [vmem:[#allocation11 + $0x110] ss:$8 sps:$4 sm:$0xff]  }
  0xe3   :  { %1533 = vmatprep.subr.bf16.mxu0 %v2087_v18  ;;  %v2111_v18 = vld [vmem:[#allocation11 + $0x154] ss:$8 sps:$4 sm:$0xff]  }
  0xe4   :  { %647 = vmatpush1.bf16.msra.mxu1 %v1989_v52 }
  0xe5   :  { %648 = vmatprep.subr.bf16.mxu1 %v1994_v55 }
  0xe6   :  { %1534 = vmatpush1.bf16.msra.mxu0 %v2085_v19  ;;  %v2109_v19 = vld [vmem:[#allocation11 + $0x150] ss:$8 sps:$4 sm:$0xff]  }
  0xe7   :  { %1535 = vmatprep.subr.bf16.mxu0 %v2090_v22  ;;  %v2117_v22 = vld [vmem:[#allocation11 + $0x174] ss:$8 sps:$4 sm:$0xff]  }
  0xe8   :  { %649 = vmatpush1.bf16.msra.mxu1 %v1992_v57 }
  0xe9   :  { %650 = vmatprep.subr.bf16.mxu1 %v1997_v59 }
  0xea   :  { %1536 = vmatpush1.bf16.msra.mxu0 %v2088_v23  ;;  %v2115_v23 = vld [vmem:[#allocation11 + $0x170] ss:$8 sps:$4 sm:$0xff]  }
  0xeb   :  { %1537 = vmatprep.subr.bf16.mxu0 %v2093_v26  ;;  %v2123_v26 = vld [vmem:[#allocation11 + $0x194] ss:$8 sps:$4 sm:$0xff]  }
  0xec   :  { %651 = vmatpush1.bf16.msra.mxu1 %v1995_v61 }
  0xed   :  { %1026 = vmatprep.subr.bf16.mxu1 %v2000_v63 }
  0xee   :  { %1538 = vmatpush1.bf16.msra.mxu0 %v2091_v27  ;;  %v2121_v27 = vld [vmem:[#allocation11 + $0x190] ss:$8 sps:$4 sm:$0xff]  }
  0xef   :  { %653 = vmatmul.mubr.bf16.vlgmr.msra.gmra.mrb[4].mxu1 %v2461_v9  ;;  %v2012_v9 = vld [vmem:[#allocation8 + $0x8c] ss:$16 sps:$4 sm:$0xff]   ;;  %1550 = vmatprep.subr.bf16.mxu0 %v2096_v30 }
  0xf0   :  { %1027 = vmatpush1.bf16.msra.mxu1 %v1998_v1  ;;  %1058 = vmatprep.mubr.bf16.mxu1 %v2458_v53  ;;  %v2010_v53 = vld [vmem:[#allocation8 + $0x88] ss:$16 sps:$4 sm:$0xff]   ;;  %v2129_v30 = vld [vmem:[#allocation11 + $0x1b4] ss:$8 sps:$4 sm:$0xff]  }
  0xf1   :  { %1028 = vmatprep.subr.bf16.mxu1 %v2003_v2 }
  0xf4   :  { %1029 = vmatpush1.bf16.msra.mxu1 %v2001_v5 }
  0xf5   :  { %1030 = vmatprep.subr.bf16.mxu1 %v2006_v6 }
  0xf8   :  { %1031 = vmatpush1.bf16.msra.mxu1 %v2004_v11  ;;  %v2094_v11 = vld [vmem:[#allocation11 + $0x100] ss:$8 sps:$4 sm:$0xff]  }
  0xf9   :  { %1032 = vmatprep.subr.bf16.mxu1 %v2009_v12  ;;  %v2099_v12 = vld [vmem:[#allocation11 + $0x114] ss:$8 sps:$4 sm:$0xff]  }
  0xfc   :  { %1033 = vmatpush1.bf16.msra.mxu1 %v2007_v14  ;;  %v2102_v14 = vld [vmem:[#allocation11 + $0x124] ss:$8 sps:$4 sm:$0xff]  }
  0xfd   :  { %1034 = vmatprep.subr.bf16.mxu1 %v2012_v9  ;;  %v2100_v9 = vld [vmem:[#allocation11 + $0x120] ss:$8 sps:$4 sm:$0xff]  }
 0x100   :  { %1035 = vmatpush1.bf16.msra.mxu1 %v2010_v53  ;;  %v2105_v53 = vld [vmem:[#allocation11 + $0x134] ss:$8 sps:$4 sm:$0xff]  }
 0x101   :  { %1036 = vmatprep.subr.bf16.mxu1 %v2015_v15  ;;  %v2103_v15 = vld [vmem:[#allocation11 + $0x130] ss:$8 sps:$4 sm:$0xff]  }
 0x104   :  { %1037 = vmatpush1.bf16.msra.mxu1 %v2013_v16  ;;  %v2108_v16 = vld [vmem:[#allocation11 + $0x144] ss:$8 sps:$4 sm:$0xff]  }
 0x105   :  { %1038 = vmatprep.subr.bf16.mxu1 %v2018_v17  ;;  %v2106_v17 = vld [vmem:[#allocation11 + $0x140] ss:$8 sps:$4 sm:$0xff]  }
 0x108   :  { %1039 = vmatpush1.bf16.msra.mxu1 %v2016_v20  ;;  %v2114_v20 = vld [vmem:[#allocation11 + $0x164] ss:$8 sps:$4 sm:$0xff]  }
 0x109   :  { %1040 = vmatprep.subr.bf16.mxu1 %v2021_v21  ;;  %v2112_v21 = vld [vmem:[#allocation11 + $0x160] ss:$8 sps:$4 sm:$0xff]  }
 0x10c   :  { %1041 = vmatpush1.bf16.msra.mxu1 %v2019_v24  ;;  %v2120_v24 = vld [vmem:[#allocation11 + $0x184] ss:$8 sps:$4 sm:$0xff]  }
 0x10d   :  { %1042 = vmatprep.subr.bf16.mxu1 %v2024_v25  ;;  %v2118_v25 = vld [vmem:[#allocation11 + $0x180] ss:$8 sps:$4 sm:$0xff]  }
 0x110   :  { %1043 = vmatpush1.bf16.msra.mxu1 %v2022_v28  ;;  %v2126_v28 = vld [vmem:[#allocation11 + $0x1a4] ss:$8 sps:$4 sm:$0xff]  }
 0x111   :  { %1044 = vmatprep.subr.bf16.mxu1 %v2027_v29  ;;  %v2124_v29 = vld [vmem:[#allocation11 + $0x1a0] ss:$8 sps:$4 sm:$0xff]  }
 0x114   :  { %1045 = vmatpush1.bf16.msra.mxu1 %v2025_v31  ;;  %v2127_v31 = vld [vmem:[#allocation11 + $0x1b0] ss:$8 sps:$4 sm:$0xff]  }
 0x115   :  { %1046 = vmatprep.subr.bf16.mxu1 %v2030_v32  ;;  %v2132_v32 = vld [vmem:[#allocation11 + $0x1c4] ss:$8 sps:$4 sm:$0xff]  }
 0x118   :  { %1047 = vmatpush1.bf16.msra.mxu1 %v2028_v33  ;;  %v2130_v33 = vld [vmem:[#allocation11 + $0x1c0] ss:$8 sps:$4 sm:$0xff]  }
 0x119   :  { %1048 = vmatprep.subr.bf16.mxu1 %v2033_v34  ;;  %v2135_v34 = vld [vmem:[#allocation11 + $0x1d4] ss:$8 sps:$4 sm:$0xff]  }
 0x11c   :  { %1049 = vmatpush1.bf16.msra.mxu1 %v2031_v35  ;;  %v2133_v35 = vld [vmem:[#allocation11 + $0x1d0] ss:$8 sps:$4 sm:$0xff]  }
 0x11d   :  { %1050 = vmatprep.subr.bf16.mxu1 %v2036_v36  ;;  %v2138_v36 = vld [vmem:[#allocation11 + $0x1e4] ss:$8 sps:$4 sm:$0xff]  }
 0x120   :  { %1051 = vmatpush1.bf16.msra.mxu1 %v2034_v37  ;;  %v2136_v37 = vld [vmem:[#allocation11 + $0x1e0] ss:$8 sps:$4 sm:$0xff]  }
 0x121   :  { %1052 = vmatprep.subr.bf16.mxu1 %v2039_v38  ;;  %v2141_v38 = vld [vmem:[#allocation11 + $0x1f4] ss:$8 sps:$4 sm:$0xff]  }
 0x124   :  { %1053 = vmatpush1.bf16.msra.mxu1 %v2037_v39  ;;  %v2139_v39 = vld [vmem:[#allocation11 + $0x1f0] ss:$8 sps:$4 sm:$0xff]  }
 0x125   :  { %1054 = vmatprep.subr.bf16.mxu1 %v2042_v40  ;;  %v1081_v40 = vsub.s32 2, %v2470_v45 }
 0x128   :  { %1055 = vmatpush1.bf16.msra.mxu1 %v2040_v41  ;;  %v1085_v41 = vsub.s32 3, %v2470_v45 }
 0x129   :  { %1056 = vmatprep.subr.bf16.mxu1 %v2045_v42  ;;  %v1082_v42 = vrot.slane %v2476_v47, %v1081_v40 }
 0x12c   :  { %1057 = vmatpush1.bf16.msra.mxu1 %v2043_v43  ;;  %v1086_v43 = vrot.slane %v2476_v47, %v1085_v41 }
 0x12f   :  { %1059 = vmatmul.mubr.bf16.vlgmr.msra.gmra.mrb[4].mxu1 %v2463_v10  ;;  %v1078_v10 = vrot.slane %v2476_v47, %v1077_v48  ;;  %v1175_v47 = vld [vmem:[%s2518_s7] sm:$0x3]  ;;  %s2274_s7 = scalar_lea.vmem %s1613_s19, 256 }
 0x130   :  { %p2275_p6 = scmp.ne.s32.totalorder %s1613_s19, %s2274_s7  ;;  %p2280_p8 = scmp.lt.s32.totalorder %s2274_s7, %s2274_s7 }
 0x132   :  { %p2281_p9 = por %p2280_p8, %p2279_p7 }
 0x134   :  { %p2282_p10 = pnand %p2281_p9, %p2275_p6 }
 0x182   :  { %v611_v50 = vpop.f32.mrb[0].mxu1 }
 0x183   :  { %v1017_v51 = vpop.f32.mrb[0].mxu0  ;;  %v613_v54 = vpop.f32.mrb[1].mxu1 }
 0x184   :  { %v1018_v52 = vadd.f32 %v1017_v51, %v611_v50  ;;  %v1019_v55 = vpop.f32.mrb[1].mxu0  ;;  %v615_v57 = vpop.f32.mrb[2].mxu1 }
 0x185   :  { %v1020_v56 = vadd.f32 %v1019_v55, %v613_v54  ;;  %v1021_v58 = vpop.f32.mrb[2].mxu0  ;;  %v617_v61 = vpop.f32.mrb[3].mxu1 }
 0x186   :  { %v1091_v59 = vadd.f32 %v1074_v49, %v1018_v52  ;;  %v1022_v60 = vadd.f32 %v1021_v58, %v615_v57  ;;  %v1023_v62 = vpop.f32.mrb[3].mxu0 }
 0x187   :  { %v1092_v63 = vadd.f32 %v1078_v10, %v1020_v56  ;;  %v1024_v0 = vadd.f32 %v1023_v62, %v617_v61  ;;  %v1180_v62 = vrot.slane %v1175_v47, %v1073_v46 }
 0x188   :  { %v1099_v1 = vmax.f32 %v1091_v59, 0.0  ;;  %v1095_v2 = vadd.f32 %v1074_v49, %v1022_v60 }
 0x189   :  { %v1096_v3 = vadd.f32 %v1078_v10, %v1024_v0  ;;  %v1100_v5 = vmax.f32 %v1092_v63, 0.0  ;;  %v1184_v63 = vrot.slane %v1175_v47, %v1077_v48 }
 0x18a   :  { %v1103_v4 = vmax.f32 %v1095_v2, 0.0 }
 0x18b   :  { %v1104_v6 = vmax.f32 %v1096_v3, 0.0 }
 0x18c   :  { %v1107_v7 = vpack.c.bf16 %v1103_v4, %v1099_v1 }
 0x18d   :  { %v1108_v8 = vpack.c.bf16 %v1104_v6, %v1100_v5 }
 0x18f   :  { %1539 = vmatprep.mubr.bf16.mxu0 %v1108_v8 }
 0x190   :  { %1540 = vmatmul.mubr.bf16.vlgmr.msra.gmra.mrb[4].mxu0 %v1107_v7 }
 0x191   :  { %1551 = vmatpush1.bf16.msra.mxu0 %v2094_v11 }
 0x192   :  { %1552 = vmatprep.subr.bf16.mxu0 %v2099_v12 }
 0x195   :  { %1553 = vmatpush1.bf16.msra.mxu0 %v2097_v13 }
 0x196   :  { %1554 = vmatprep.subr.bf16.mxu0 %v2102_v14 }
 0x199   :  { %1555 = vmatpush1.bf16.msra.mxu0 %v2100_v9 }
 0x19a   :  { %1556 = vmatprep.subr.bf16.mxu0 %v2105_v53 }
 0x19d   :  { %1557 = vmatpush1.bf16.msra.mxu0 %v2103_v15 }
 0x19e   :  { %1558 = vmatprep.subr.bf16.mxu0 %v2108_v16 }
 0x1a1   :  { %1559 = vmatpush1.bf16.msra.mxu0 %v2106_v17 }
 0x1a2   :  { %1560 = vmatprep.subr.bf16.mxu0 %v2111_v18 }
 0x1a5   :  { %1561 = vmatpush1.bf16.msra.mxu0 %v2109_v19 }
 0x1a6   :  { %1562 = vmatprep.subr.bf16.mxu0 %v2114_v20 }
 0x1a9   :  { %1563 = vmatpush1.bf16.msra.mxu0 %v2112_v21 }
 0x1aa   :  { %1564 = vmatprep.subr.bf16.mxu0 %v2117_v22 }
 0x1ad   :  { %1565 = vmatpush1.bf16.msra.mxu0 %v2115_v23 }
 0x1ae   :  { %1566 = vmatprep.subr.bf16.mxu0 %v2120_v24 }
 0x1b1   :  { %1567 = vmatpush1.bf16.msra.mxu0 %v2118_v25 }
 0x1b2   :  { %1568 = vmatprep.subr.bf16.mxu0 %v2123_v26 }
 0x1b5   :  { %1569 = vmatpush1.bf16.msra.mxu0 %v2121_v27 }
 0x1b6   :  { %1570 = vmatprep.subr.bf16.mxu0 %v2126_v28 }
 0x1b9   :  { %1571 = vmatpush1.bf16.msra.mxu0 %v2124_v29 }
 0x1ba   :  { %1572 = vmatprep.subr.bf16.mxu0 %v2129_v30 }
 0x1bd   :  { %1573 = vmatpush1.bf16.msra.mxu0 %v2127_v31 }
 0x1be   :  { %1574 = vmatprep.subr.bf16.mxu0 %v2132_v32 }
 0x1c1   :  { %1575 = vmatpush1.bf16.msra.mxu0 %v2130_v33 }
 0x1c2   :  { %1576 = vmatprep.subr.bf16.mxu0 %v2135_v34 }
 0x1c5   :  { %1577 = vmatpush1.bf16.msra.mxu0 %v2133_v35 }
 0x1c6   :  { %1578 = vmatprep.subr.bf16.mxu0 %v2138_v36 }
 0x1c9   :  { %1579 = vmatpush1.bf16.msra.mxu0 %v2136_v37 }
 0x1ca   :  { %1580 = vmatprep.subr.bf16.mxu0 %v2141_v38 }
 0x1cd   :  { %1581 = vmatpush1.bf16.msra.mxu0 %v2139_v39 }
 0x202   :  { %v1060_v44 = vpop.f32.mrb[4].mxu1 }
 0x203   :  { %v1093_v49 = vadd.f32 %v1082_v42, %v1060_v44  ;;  %v1062_v50 = vpop.f32.mrb[5].mxu1 }
 0x204   :  { %v1094_v51 = vadd.f32 %v1086_v43, %v1062_v50  ;;  %v1064_v10 = vpop.f32.mrb[6].mxu1 }
 0x205   :  { %v1097_v52 = vadd.f32 %v1082_v42, %v1064_v10  ;;  %v1066_v54 = vpop.f32.mrb[7].mxu1  ;;  %v1101_v56 = vmax.f32 %v1093_v49, 0.0 }
 0x206   :  { %v1098_v55 = vadd.f32 %v1086_v43, %v1066_v54  ;;  %v1102_v58 = vmax.f32 %v1094_v51, 0.0 }
 0x207   :  { %v1105_v57 = vmax.f32 %v1097_v52, 0.0 }
 0x208   :  { %v1106_v59 = vmax.f32 %v1098_v55, 0.0 }
 0x209   :  { %v1109_v60 = vpack.c.bf16 %v1105_v57, %v1101_v56 }
 0x20a   :  { %v1110_v61 = vpack.c.bf16 %v1106_v59, %v1102_v58 }
 0x20c   :  { %1582 = vmatprep.mubr.bf16.mxu0 %v1110_v61 }
 0x20d   :  { %1583 = vmatmul.mubr.bf16.vlgmr.msra.gmra.mrb[4].mxu0 %v1109_v60 }
 0x2e0   :  { %v1584_v0 = vpop.f32.mrb[4].mxu0 }
 0x2e1   :  { %v1828_v1 = vadd.f32 %v1584_v0, %v1180_v62  ;;  %v1586_v2 = vpop.f32.mrb[5].mxu0 }
 0x2e2   :  { %v1829_v3 = vadd.f32 %v1586_v2, %v1184_v63  ;;  %v1588_v4 = vpop.f32.mrb[6].mxu0 }
 0x2e3   :  { %v1830_v5 = vadd.f32 %v1588_v4, %v1180_v62  ;;  %v1590_v6 = vpop.f32.mrb[7].mxu0 }
 0x2e4   :  { %v1822_v7 = vpack.c.bf16 %v1829_v3, %v1828_v1  ;;  %v1831_v8 = vadd.f32 %v1590_v6, %v1184_v63 }
 0x2e6   :  { %1605 = vst [vmem:[#allocation13] sm:$0xff] %v1822_v7  ;;  %v1823_v11 = vpack.c.bf16 %v1831_v8, %v1830_v5 }
 0x2e8   :  { %1606 = vst [vmem:[#allocation13 + $0x8] sm:$0xff] %v1823_v11 }
 0x2e9   :  { %2285 = shalt.err (!%p2282_p10)
}
 0x2ea   :  { %s2286_s3 = scalar_lea.hbm %s2519_s8, 256 }
 0x2eb   :  { %p2287_p11 = scmp.ne.s32.totalorder %s2519_s8, %s2286_s3  ;;  %p2290_p12 = scmp.lt.u32.totalorder %s2286_s3, %s2519_s8 }
 0x2ed   :  { %p2292_p13 = pnand %p2290_p12, %p2287_p11 }
 0x2ef   :  { %2295 = shalt.err (!%p2292_p13)
}
 0x2f0   :  { %1618 = dma.vmem_to_hbm [thread:$0]  %s1613_s19, 256, %s2519_s8, [#allocation4], %s2307_s15, %s2307_s15, %s2308_s16  }
 0x2f1   :  { %2304 = dma.done.wait [#allocation4], 256  }
 0x2f2   :  { %2305 = vsyncadd [#allocation4], 4294967040 }
 0x2f3   :  { %1622 = vsyncpa [#allocation3], 1 }
 0x2f4   :  { %1623 = vsyncpa [#allocation6], 1 }
 0x2f5   :  { %1624 = vsyncpa [#allocation9], 1 }
 0x2f6   :  { %1625 = vsyncpa [#allocation12], 1 }
 0x2f7   :  { %1626 = vsyncpa [#allocation4], 1 }

</bundles_post_ra>
